<compile_context>
chip_gen: v5e
topology: v5e:2x2
jax: 0.10.0
libtpu: 0.0.40
codegen_flags: <defaults>
</compile_context>

<pallas_src>
import functools
import math

import jax
import jax.numpy as jnp
from jax import lax
from jax.experimental import pallas as pl
from jax.experimental.pallas import tpu as pltpu

EPS = 1e-5
NEG_INF = -1e30
LANE = 128


def _layer_norm(x, g, b):
    # f32 LayerNorm on a (T, E) slab; g/b are (1, E) row vectors (free broadcast).
    mu = jnp.mean(x, axis=-1, keepdims=True)
    var = jnp.mean((x - mu) ** 2, axis=-1, keepdims=True)
    return (x - mu) * lax.rsqrt(var + EPS) * g + b


# --------------------------------------------------------------------------- #
# Fused Pallas kernel: n_blocks x TransformerBlock + final LN + output head
# --------------------------------------------------------------------------- #
def fused_forward_kernel(x_ref, wqkv_ref, wo_ref, bo_ref,
                         ln1_g_ref, ln1_b_ref, ln2_g_ref, ln2_b_ref,
                         w1_ref, b1_ref, w2_ref, b2_ref,
                         lnf_g_ref, lnf_b_ref, w_out_ref, b_out_ref,
                         o_ref, xn_ref, *, n_blocks, n_heads, head_size):
    nh, hd = n_heads, head_size
    NH = nh * hd
    T = x_ref.shape[0]

    # Heavy transformer-block work runs once per sequence (column tile j == 0);
    # the final normalized activations are cached in VMEM scratch and re-used by
    # every output-column tile of the ChunkStackLinear head.
    @pl.when(pl.program_id(1) == 0)
    def _blocks():
        x = x_ref[...].astype(jnp.float32)                 # (T, E) residual, f32
        wqkv = wqkv_ref[...]                               # (E, 3*NH) bf16
        wo = wo_ref[...]                                   # (NH, E)   bf16
        w1 = w1_ref[...]                                   # (E, H)    bf16
        w2 = w2_ref[...]                                   # (H, E)    bf16
        g1, c1 = ln1_g_ref[...], ln1_b_ref[...]            # (1, E) f32
        g2, c2 = ln2_g_ref[...], ln2_b_ref[...]
        bo, b1, b2 = bo_ref[...], b1_ref[...], b2_ref[...]

        # causal mask as a single (T, T) additive bias
        # TODO(synk): exact "fixed lookahead" mask variant unavailable; causal used.
        row = lax.broadcasted_iota(jnp.int32, (T, T), 0)
        col = lax.broadcasted_iota(jnp.int32, (T, T), 1)
        mask_bias = jnp.where(col <= row, 0.0, NEG_INF).astype(jnp.float32)

        def block_fn(_, xc):
            # ---- multi-head causal self-attention (pre-LN) ----
            xn = _layer_norm(xc, g1, c1).astype(jnp.bfloat16)
            # single lane-dense fused q/k/v projection (scale folded into wq)
            qkv = jnp.dot(xn, wqkv, preferred_element_type=jnp.float32)  # (T, 3NH)
            heads = []
            for h in range(nh):                            # static & tiny
                q = qkv[:, h * hd:(h + 1) * hd].astype(jnp.bfloat16)
                k = qkv[:, NH + h * hd:NH + (h + 1) * hd].astype(jnp.bfloat16)
                v = qkv[:, 2 * NH + h * hd:2 * NH + (h + 1) * hd].astype(jnp.bfloat16)
                s = lax.dot_general(q, k, (((1,), (1,)), ((), ())),
                                    preferred_element_type=jnp.float32)  # q @ k.T
                s = s + mask_bias
                s = s - jnp.max(s, axis=-1, keepdims=True)
                p = jnp.exp(s)                             # EUP
                denom = jnp.sum(p, axis=-1, keepdims=True)
                ho = jnp.dot(p.astype(jnp.bfloat16), v,
                             preferred_element_type=jnp.float32)          # (T, hd)
                # normalize after attn@v: (T,hd) multiply instead of (T,T)
                heads.append(ho * pl.reciprocal(denom, approx=True))
            cat = jnp.concatenate(heads, axis=-1).astype(jnp.bfloat16)    # (T, NH)
            xc = xc + jnp.dot(cat, wo, preferred_element_type=jnp.float32) + bo

            # ---- feedforward (pre-LN, ReLU) ----
            xn2 = _layer_norm(xc, g2, c2).astype(jnp.bfloat16)
            hid = jnp.maximum(
                jnp.dot(xn2, w1, preferred_element_type=jnp.float32) + b1, 0.0)
            ff = jnp.dot(hid.astype(jnp.bfloat16), w2,
                         preferred_element_type=jnp.float32) + b2
            return xc + ff

        # nn.Sequential of ONE shared block applied n_blocks times
        x = lax.fori_loop(0, n_blocks, block_fn, x, unroll=False)
        xn_ref[...] = _layer_norm(
            x, lnf_g_ref[...], lnf_b_ref[...]).astype(jnp.bfloat16)

    # ChunkStackLinear head: one lane-dense (T, tcv) column tile per grid step.
    o_ref[...] = (jnp.dot(xn_ref[...], w_out_ref[...],
                          preferred_element_type=jnp.float32) + b_out_ref[...])


# --------------------------------------------------------------------------- #
# Wrappers
# --------------------------------------------------------------------------- #
def fused_forward(x2d, kp, *, n_blocks, n_heads, head_size, batch, seq):
    BT, E = x2d.shape
    B, T = batch, seq
    H = kp["w1"].shape[1]
    CVp = kp["w_out"].shape[1]
    nh, hd = n_heads, head_size
    NH = nh * hd

    # output-column tile (lane-dense multiple of 128, <= 512)
    tcv = next(c for c in (512, 384, 256, 128) if CVp % c == 0)
    n_cv = CVp // tcv

    def const2(b, j):
        return (0, 0)

    in_specs = [
        pl.BlockSpec((T, E), lambda b, j: (b, 0)),           # x: one sequence
        pl.BlockSpec(kp["wqkv"].shape, const2),
        pl.BlockSpec(kp["wo"].shape, const2),
        pl.BlockSpec(kp["bo"].shape, const2),
        pl.BlockSpec(kp["ln1_g"].shape, const2),
        pl.BlockSpec(kp["ln1_b"].shape, const2),
        pl.BlockSpec(kp["ln2_g"].shape, const2),
        pl.BlockSpec(kp["ln2_b"].shape, const2),
        pl.BlockSpec(kp["w1"].shape, const2),
        pl.BlockSpec(kp["b1"].shape, const2),
        pl.BlockSpec(kp["w2"].shape, const2),
        pl.BlockSpec(kp["b2"].shape, const2),
        pl.BlockSpec(kp["lnf_g"].shape, const2),
        pl.BlockSpec(kp["lnf_b"].shape, const2),
        pl.BlockSpec((E, tcv), lambda b, j: (0, j)),         # w_out column tile
        pl.BlockSpec((1, tcv), lambda b, j: (0, j)),         # b_out column tile
    ]
    out_spec = pl.BlockSpec((T, tcv), lambda b, j: (b, j))

    inputs = (x2d, kp["wqkv"], kp["wo"], kp["bo"],
              kp["ln1_g"], kp["ln1_b"], kp["ln2_g"], kp["ln2_b"],
              kp["w1"], kp["b1"], kp["w2"], kp["b2"],
              kp["lnf_g"], kp["lnf_b"], kp["w_out"], kp["b_out"])

    def nb(a):
        return math.prod(a.shape) * jnp.dtype(a.dtype).itemsize

    # VMEM budget: resident weights + double-buffered streamed tiles + scratch/interm.
    resident = sum(nb(a) for a in inputs[1:14])
    streamed = 2 * (T * E * 4 + E * tcv * 2 + tcv * 4 + T * tcv * 4)
    interm = 4 * T * max(3 * NH, H, E) * 4 + 2 * T * T * 4 + T * E * 2
    vmem_limit = int(min(64 * 1024 * 1024,
                         max(16 * 1024 * 1024,
                             2 * (resident + streamed + interm))))

    # advisory cost estimate for the XLA scheduler around the custom call
    blk_flops = (2 * T * E * 3 * NH            # fused qkv projection
                 + nh * (2 * T * T * hd * 2)   # scores + attn@v
                 + 2 * T * NH * E              # concat-head output projection
                 + 4 * T * E * H)              # feedforward
    flops = B * (n_blocks * blk_flops + 2 * T * E * CVp)
    transc = B * (n_blocks * (nh * T * T + 3 * T) + T)
    nbytes = sum(nb(a) for a in inputs) + BT * CVp * 4

    kernel = functools.partial(fused_forward_kernel, n_blocks=n_blocks,
                               n_heads=nh, head_size=hd)
    return pl.pallas_call(
        kernel,
        out_shape=jax.ShapeDtypeStruct((BT, CVp), jnp.float32),
        grid=(B, n_cv),
        in_specs=in_specs,
        out_specs=out_spec,
        scratch_shapes=[pltpu.VMEM((T, E), jnp.bfloat16)],
        compiler_params=pltpu.CompilerParams(
            dimension_semantics=("parallel", "arbitrary"),
            vmem_limit_bytes=vmem_limit),
        cost_estimate=pl.CostEstimate(flops=flops, transcendentals=transc,
                                      bytes_accessed=nbytes),
    )(*inputs)


def prepare_kernel_params(params, *, n_heads, head_size, vocab_size, chunk_size):
    """Rearrange module-layout params into kernel layout (fused/flat, bf16, padded)."""
    blk, head = params["block"], params["head"]
    scale = float(head_size) ** -0.5
    # fused, lane-dense q/k/v weight; attention scale folded into wq columns.
    wqkv = jnp.concatenate([blk["wq"] * scale, blk["wk"], blk["wv"]],
                           axis=1).astype(jnp.bfloat16)          # (E, 3*nh*hd)
    wo = blk["wo"].astype(jnp.bfloat16)                          # (nh*hd, E)

    cv = chunk_size * vocab_size
    cvp = ((cv + LANE - 1) // LANE) * LANE                       # lane-dense width
    w_out = jnp.pad(head["w_out"], ((0, 0), (0, cvp - cv))).astype(jnp.bfloat16)
    b_out = jnp.pad(head["b_out"], ((0, 0), (0, cvp - cv)))

    return {
        "wqkv": wqkv, "wo": wo, "bo": blk["bo"],
        "ln1_g": blk["ln1_g"], "ln1_b": blk["ln1_b"],
        "ln2_g": blk["ln2_g"], "ln2_b": blk["ln2_b"],
        "w1": blk["w1"].astype(jnp.bfloat16), "b1": blk["b1"],
        "w2": blk["w2"].astype(jnp.bfloat16), "b2": blk["b2"],
        "lnf_g": head["lnf_g"], "lnf_b": head["lnf_b"],
        "w_out": w_out, "b_out": b_out,
    }


def sin_cos_position_encoding(t, embed_size):
    pos = jnp.arange(t, dtype=jnp.float32)[:, None]
    i = jnp.arange(0, embed_size, 2, dtype=jnp.float32)
    div = jnp.exp(-math.log(10000.0) * i / embed_size)
    pe = jnp.zeros((t, embed_size), jnp.float32)
    pe = pe.at[:, 0::2].set(jnp.sin(pos * div))
    pe = pe.at[:, 1::2].set(jnp.cos(pos * div))
    return pe


def transformer_fixed_lookahead_forward(tokens, params, *, n_blocks, n_heads,
                                        head_size, chunk_size, vocab_size):
    B, T = tokens.shape
    E = params["tok_emb"].shape[1]
    # embedding gather + positional encoding: plain-JAX glue around the kernel.
    x = jnp.take(params["tok_emb"], tokens, axis=0)          # (B, T, E)
    x = x + sin_cos_position_encoding(T, E)[None, :, :]
    x2d = x.reshape(B * T, E).astype(jnp.float32)

    kp = prepare_kernel_params(params, n_heads=n_heads, head_size=head_size,
                               vocab_size=vocab_size, chunk_size=chunk_size)
    logits = fused_forward(x2d, kp, n_blocks=n_blocks, n_heads=n_heads,
                           head_size=head_size, batch=B, seq=T)
    cv = chunk_size * vocab_size
    # drop lane padding; ChunkStackLinear "stack" -> (B, T, chunk, vocab)
    return logits[:, :cv].reshape(B, T, chunk_size, vocab_size)


# --------------------------------------------------------------------------- #
# Params + pure-JAX f32 reference (for validation)
# --------------------------------------------------------------------------- #
def init_params(key, *, vocab_size, embed_size, head_size, hidden_size,
                n_heads, chunk_size):
    HD = n_heads * head_size
    ks = jax.random.split(key, 10)
    s = 0.02
    return {
        "tok_emb": s * jax.random.normal(ks[0], (vocab_size, embed_size), jnp.float32),
        "block": {
            "ln1_g": jnp.ones((1, embed_size), jnp.float32),
            "ln1_b": jnp.zeros((1, embed_size), jnp.float32),
            "wq": s * jax.random.normal(ks[1], (embed_size, HD), jnp.float32),
            "wk": s * jax.random.normal(ks[2], (embed_size, HD), jnp.float32),
            "wv": s * jax.random.normal(ks[3], (embed_size, HD), jnp.float32),
            "wo": s * jax.random.normal(ks[4], (HD, embed_size), jnp.float32),
            "bo": jnp.zeros((1, embed_size), jnp.float32),
            "ln2_g": jnp.ones((1, embed_size), jnp.float32),
            "ln2_b": jnp.zeros((1, embed_size), jnp.float32),
            "w1": s * jax.random.normal(ks[5], (embed_size, hidden_size), jnp.float32),
            "b1": jnp.zeros((1, hidden_size), jnp.float32),
            "w2": s * jax.random.normal(ks[6], (hidden_size, embed_size), jnp.float32),
            "b2": jnp.zeros((1, embed_size), jnp.float32),
        },
        "head": {
            "lnf_g": jnp.ones((1, embed_size), jnp.float32),
            "lnf_b": jnp.zeros((1, embed_size), jnp.float32),
            "w_out": s * jax.random.normal(
                ks[7], (embed_size, chunk_size * vocab_size), jnp.float32),
            "b_out": jnp.zeros((1, chunk_size * vocab_size), jnp.float32),
        },
    }


def reference_forward(tokens, params, *, n_blocks, n_heads, head_size,
                      chunk_size, vocab_size):
    B, T = tokens.shape
    E = params["tok_emb"].shape[1]
    blk, head = params["block"], params["head"]

    def ln(x, g, b):
        mu = x.mean(-1, keepdims=True)
        var = ((x - mu) ** 2).mean(-1, keepdims=True)
        return (x - mu) / jnp.sqrt(var + EPS) * g + b

    x = jnp.take(params["tok_emb"], tokens, axis=0)
    x = x + sin_cos_position_encoding(T, E)[None]
    mask = jnp.tril(jnp.ones((T, T), bool))
    scale = head_size ** -0.5
    for _ in range(n_blocks):
        xn = ln(x, blk["ln1_g"], blk["ln1_b"])
        q = (xn @ blk["wq"]).reshape(B, T, n_heads, head_size).transpose(0, 2, 1, 3)
        k = (xn @ blk["wk"]).reshape(B, T, n_heads, head_size).transpose(0, 2, 1, 3)
        v = (xn @ blk["wv"]).reshape(B, T, n_heads, head_size).transpose(0, 2, 1, 3)
        s = jnp.einsum("bhqd,bhkd->bhqk", q, k) * scale
        s = jnp.where(mask, s, -jnp.inf)
        p = jax.nn.softmax(s, axis=-1)
        o = jnp.einsum("bhqk,bhkd->bhqd", p, v).transpose(0, 2, 1, 3).reshape(B, T, -1)
        x = x + o @ blk["wo"] + blk["bo"]
        xn2 = ln(x, blk["ln2_g"], blk["ln2_b"])
        x = x + jnp.maximum(xn2 @ blk["w1"] + blk["b1"], 0.0) @ blk["w2"] + blk["b2"]
    xf = ln(x, head["lnf_g"], head["lnf_b"])
    logits = xf @ head["w_out"] + head["b_out"]
    return logits.reshape(B, T, chunk_size, vocab_size)


if __name__ == "__main__":
    # small config consistent with the module's __init__
    context_size = 16
    vocab_size = 32
    embed_size = 32
    n_heads = 4
    head_size = embed_size // n_heads      # 8
    hidden_size = 64
    n_blocks = 2
    chunk_size = 2
    B, T = 2, 8                            # T <= context_size

    key = jax.random.PRNGKey(0)
    pkey, xkey = jax.random.split(key)
    params = init_params(pkey, vocab_size=vocab_size, embed_size=embed_size,
                         head_size=head_size, hidden_size=hidden_size,
                         n_heads=n_heads, chunk_size=chunk_size)
    tokens = jax.random.randint(xkey, (B, T), 0, vocab_size, dtype=jnp.int32)

    fwd = jax.jit(functools.partial(
        transformer_fixed_lookahead_forward, n_blocks=n_blocks, n_heads=n_heads,
        head_size=head_size, chunk_size=chunk_size, vocab_size=vocab_size))
    logits = jax.block_until_ready(fwd(tokens, params))

    assert logits.shape == (B, T, chunk_size, vocab_size)
    assert logits.dtype == jnp.float32
    assert bool(jnp.all(jnp.isfinite(logits)))

    ref = reference_forward(tokens, params, n_blocks=n_blocks, n_heads=n_heads,
                            head_size=head_size, chunk_size=chunk_size,
                            vocab_size=vocab_size)
    err = float(jnp.max(jnp.abs(logits - ref)))
    assert err < 5e-2, f"max |kernel - ref| = {err}"
    print("KERNEL_OK")
</pallas_src>

<mosaic_0001>
module attributes {stable_mosaic.version = 11 : i64} {
  func.func @fused_forward_kernel(%arg0: i32, %arg1: i32, %arg2: memref<8x32xf32, #tpu.memory_space<vmem>>, %arg3: memref<32x96xbf16, #tpu.memory_space<vmem>>, %arg4: memref<32x32xbf16, #tpu.memory_space<vmem>>, %arg5: memref<1x32xf32, #tpu.memory_space<vmem>>, %arg6: memref<1x32xf32, #tpu.memory_space<vmem>>, %arg7: memref<1x32xf32, #tpu.memory_space<vmem>>, %arg8: memref<1x32xf32, #tpu.memory_space<vmem>>, %arg9: memref<1x32xf32, #tpu.memory_space<vmem>>, %arg10: memref<32x64xbf16, #tpu.memory_space<vmem>>, %arg11: memref<1x64xf32, #tpu.memory_space<vmem>>, %arg12: memref<64x32xbf16, #tpu.memory_space<vmem>>, %arg13: memref<1x32xf32, #tpu.memory_space<vmem>>, %arg14: memref<1x32xf32, #tpu.memory_space<vmem>>, %arg15: memref<1x32xf32, #tpu.memory_space<vmem>>, %arg16: memref<32x128xbf16, #tpu.memory_space<vmem>>, %arg17: memref<1x128xf32, #tpu.memory_space<vmem>>, %arg18: memref<8x128xf32, #tpu.memory_space<vmem>>, %arg19: memref<8x32xbf16, #tpu.memory_space<vmem>>) attributes {dimension_semantics = [#tpu.dimension_semantics<parallel>, #tpu.dimension_semantics<arbitrary>], iteration_bounds = array<i64: 2, 1>, scalar_prefetch = 0 : i64, scratch_operands = 1 : i64, tpu.core_type = #tpu.core_type<tc>, window_params = [{transform_indices = @transform_0, window_bounds = array<i64: 8, 32>}, {pipeline_mode = #tpu.pipeline_mode<synchronous>, transform_indices = @transform_1, window_bounds = array<i64: 32, 96>}, {pipeline_mode = #tpu.pipeline_mode<synchronous>, transform_indices = @transform_2, window_bounds = array<i64: 32, 32>}, {pipeline_mode = #tpu.pipeline_mode<synchronous>, transform_indices = @transform_3, window_bounds = array<i64: 1, 32>}, {pipeline_mode = #tpu.pipeline_mode<synchronous>, transform_indices = @transform_4, window_bounds = array<i64: 1, 32>}, {pipeline_mode = #tpu.pipeline_mode<synchronous>, transform_indices = @transform_5, window_bounds = array<i64: 1, 32>}, {pipeline_mode = #tpu.pipeline_mode<synchronous>, transform_indices = @transform_6, window_bounds = array<i64: 1, 32>}, {pipeline_mode = #tpu.pipeline_mode<synchronous>, transform_indices = @transform_7, window_bounds = array<i64: 1, 32>}, {pipeline_mode = #tpu.pipeline_mode<synchronous>, transform_indices = @transform_8, window_bounds = array<i64: 32, 64>}, {pipeline_mode = #tpu.pipeline_mode<synchronous>, transform_indices = @transform_9, window_bounds = array<i64: 1, 64>}, {pipeline_mode = #tpu.pipeline_mode<synchronous>, transform_indices = @transform_10, window_bounds = array<i64: 64, 32>}, {pipeline_mode = #tpu.pipeline_mode<synchronous>, transform_indices = @transform_11, window_bounds = array<i64: 1, 32>}, {pipeline_mode = #tpu.pipeline_mode<synchronous>, transform_indices = @transform_12, window_bounds = array<i64: 1, 32>}, {pipeline_mode = #tpu.pipeline_mode<synchronous>, transform_indices = @transform_13, window_bounds = array<i64: 1, 32>}, {transform_indices = @transform_14, window_bounds = array<i64: 32, 128>}, {transform_indices = @transform_15, window_bounds = array<i64: 1, 128>}, {transform_indices = @transform_16, window_bounds = array<i64: 8, 128>}]} {
    %c0_i32 = arith.constant 0 : i32
    %0 = arith.cmpi eq, %arg1, %c0_i32 : i32
    %1 = arith.extui %0 : i1 to i32
    %c0_i32_0 = arith.constant 0 : i32
    %2 = arith.cmpi ne, %1, %c0_i32_0 : i32
    scf.if %2 {
      %c0_8 = arith.constant 0 : index
      %c0_9 = arith.constant 0 : index
      %10 = vector.load %arg2[%c0_8, %c0_9] : memref<8x32xf32, #tpu.memory_space<vmem>>, vector<8x32xf32>
      %c0_10 = arith.constant 0 : index
      %c0_11 = arith.constant 0 : index
      %11 = vector.load %arg3[%c0_10, %c0_11] : memref<32x96xbf16, #tpu.memory_space<vmem>>, vector<32x96xbf16>
      %c0_12 = arith.constant 0 : index
      %c0_13 = arith.constant 0 : index
      %12 = vector.load %arg4[%c0_12, %c0_13] : memref<32x32xbf16, #tpu.memory_space<vmem>>, vector<32x32xbf16>
      %c0_14 = arith.constant 0 : index
      %c0_15 = arith.constant 0 : index
      %13 = vector.load %arg10[%c0_14, %c0_15] : memref<32x64xbf16, #tpu.memory_space<vmem>>, vector<32x64xbf16>
      %c0_16 = arith.constant 0 : index
      %c0_17 = arith.constant 0 : index
      %14 = vector.load %arg12[%c0_16, %c0_17] : memref<64x32xbf16, #tpu.memory_space<vmem>>, vector<64x32xbf16>
      %c0_18 = arith.constant 0 : index
      %c0_19 = arith.constant 0 : index
      %15 = vector.load %arg6[%c0_18, %c0_19] : memref<1x32xf32, #tpu.memory_space<vmem>>, vector<1x32xf32>
      %c0_20 = arith.constant 0 : index
      %c0_21 = arith.constant 0 : index
      %16 = vector.load %arg7[%c0_20, %c0_21] : memref<1x32xf32, #tpu.memory_space<vmem>>, vector<1x32xf32>
      %c0_22 = arith.constant 0 : index
      %c0_23 = arith.constant 0 : index
      %17 = vector.load %arg8[%c0_22, %c0_23] : memref<1x32xf32, #tpu.memory_space<vmem>>, vector<1x32xf32>
      %c0_24 = arith.constant 0 : index
      %c0_25 = arith.constant 0 : index
      %18 = vector.load %arg9[%c0_24, %c0_25] : memref<1x32xf32, #tpu.memory_space<vmem>>, vector<1x32xf32>
      %c0_26 = arith.constant 0 : index
      %c0_27 = arith.constant 0 : index
      %19 = vector.load %arg5[%c0_26, %c0_27] : memref<1x32xf32, #tpu.memory_space<vmem>>, vector<1x32xf32>
      %c0_28 = arith.constant 0 : index
      %c0_29 = arith.constant 0 : index
      %20 = vector.load %arg11[%c0_28, %c0_29] : memref<1x64xf32, #tpu.memory_space<vmem>>, vector<1x64xf32>
      %c0_30 = arith.constant 0 : index
      %c0_31 = arith.constant 0 : index
      %21 = vector.load %arg13[%c0_30, %c0_31] : memref<1x32xf32, #tpu.memory_space<vmem>>, vector<1x32xf32>
      %22 = tpu.iota {dimensions = array<i32: 0>} : vector<8x8xi32>
      %23 = tpu.iota {dimensions = array<i32: 1>} : vector<8x8xi32>
      %24 = arith.cmpi sle, %23, %22 : vector<8x8xi32>
      %cst_32 = arith.constant 0.000000e+00 : f32
      %cst_33 = arith.constant -1.000000e+30 : f32
      %25 = vector.broadcast %cst_32 : f32 to vector<8x8xf32>
      %26 = vector.broadcast %cst_33 : f32 to vector<8x8xf32>
      %27 = arith.select %24, %25, %26 : vector<8x8xi1>, vector<8x8xf32>
      %c0_i32_34 = arith.constant 0 : i32
      %c2_i32 = arith.constant 2 : i32
      %28 = arith.addi %c0_i32_34, %c2_i32 : i32
      %c1_i32 = arith.constant 1 : i32
      %29 = scf.for %arg20 = %c0_i32_34 to %28 step %c1_i32 iter_args(%arg21 = %10) -> (vector<8x32xf32>)  : i32 {
        %cst_46 = arith.constant dense<0.000000e+00> : vector<8xf32>
        %56 = vector.multi_reduction <add>, %arg21, %cst_46 [1] : vector<8x32xf32> to vector<8xf32>
        %57 = vector.shape_cast %56 : vector<8xf32> to vector<8x1xf32>
        %cst_47 = arith.constant 3.200000e+01 : f32
        %58 = vector.broadcast %cst_47 : f32 to vector<8x1xf32>
        %59 = arith.divf %57, %58 : vector<8x1xf32>
        %60 = vector.broadcast %59 : vector<8x1xf32> to vector<8x32xf32>
        %61 = arith.subf %arg21, %60 : vector<8x32xf32>
        %62 = arith.mulf %61, %61 : vector<8x32xf32>
        %cst_48 = arith.constant dense<0.000000e+00> : vector<8xf32>
        %63 = vector.multi_reduction <add>, %62, %cst_48 [1] : vector<8x32xf32> to vector<8xf32>
        %64 = vector.shape_cast %63 : vector<8xf32> to vector<8x1xf32>
        %cst_49 = arith.constant 3.200000e+01 : f32
        %65 = vector.broadcast %cst_49 : f32 to vector<8x1xf32>
        %66 = arith.divf %64, %65 : vector<8x1xf32>
        %67 = vector.broadcast %59 : vector<8x1xf32> to vector<8x32xf32>
        %68 = arith.subf %arg21, %67 : vector<8x32xf32>
        %cst_50 = arith.constant 9.99999974E-6 : f32
        %69 = vector.broadcast %cst_50 : f32 to vector<8x1xf32>
        %70 = arith.addf %66, %69 : vector<8x1xf32>
        %71 = math.rsqrt %70 : vector<8x1xf32>
        %72 = vector.broadcast %71 : vector<8x1xf32> to vector<8x32xf32>
        %73 = arith.mulf %68, %72 : vector<8x32xf32>
        %74 = vector.broadcast %15 : vector<1x32xf32> to vector<8x32xf32>
        %75 = arith.mulf %73, %74 : vector<8x32xf32>
        %76 = vector.broadcast %16 : vector<1x32xf32> to vector<8x32xf32>
        %77 = arith.addf %75, %76 : vector<8x32xf32>
        %78 = arith.truncf %77 : vector<8x32xf32> to vector<8x32xbf16>
        %cst_51 = arith.constant dense<0.000000e+00> : vector<8x96xf32>
        %79 = tpu.matmul %78, %11, %cst_51 {dimension_numbers = #tpu.dot_dimension_numbers<[1], [0], [0], [1], [0, 0, 1, 1], [], []>} : vector<8x32xbf16>, vector<32x96xbf16>, vector<8x96xf32> -> vector<8x96xf32>
        %80 = vector.extract_strided_slice %79 {offsets = [0, 0], sizes = [8, 8], strides = [1, 1]} : vector<8x96xf32> to vector<8x8xf32>
        %81 = arith.truncf %80 : vector<8x8xf32> to vector<8x8xbf16>
        %82 = vector.extract_strided_slice %79 {offsets = [0, 32], sizes = [8, 8], strides = [1, 1]} : vector<8x96xf32> to vector<8x8xf32>
        %83 = arith.truncf %82 : vector<8x8xf32> to vector<8x8xbf16>
        %84 = vector.extract_strided_slice %79 {offsets = [0, 64], sizes = [8, 8], strides = [1, 1]} : vector<8x96xf32> to vector<8x8xf32>
        %85 = arith.truncf %84 : vector<8x8xf32> to vector<8x8xbf16>
        %cst_52 = arith.constant dense<0.000000e+00> : vector<8x8xf32>
        %86 = tpu.matmul %81, %83, %cst_52 {dimension_numbers = #tpu.dot_dimension_numbers<[1], [1], [0], [0], [0, 0, 1, 0], [], []>} : vector<8x8xbf16>, vector<8x8xbf16>, vector<8x8xf32> -> vector<8x8xf32>
        %87 = arith.addf %86, %27 : vector<8x8xf32>
        %cst_53 = arith.constant dense<0xFF800000> : vector<8xf32>
        %88 = vector.multi_reduction <maximumf>, %87, %cst_53 [1] : vector<8x8xf32> to vector<8xf32>
        %89 = vector.shape_cast %88 : vector<8xf32> to vector<8x1xf32>
        %90 = vector.broadcast %89 : vector<8x1xf32> to vector<8x8xf32>
        %91 = arith.subf %87, %90 : vector<8x8xf32>
        %92 = math.exp %91 : vector<8x8xf32>
        %cst_54 = arith.constant dense<0.000000e+00> : vector<8xf32>
        %93 = vector.multi_reduction <add>, %92, %cst_54 [1] : vector<8x8xf32> to vector<8xf32>
        %94 = vector.shape_cast %93 : vector<8xf32> to vector<8x1xf32>
        %95 = arith.truncf %92 : vector<8x8xf32> to vector<8x8xbf16>
        %cst_55 = arith.constant dense<0.000000e+00> : vector<8x8xf32>
        %96 = tpu.matmul %95, %85, %cst_55 {dimension_numbers = #tpu.dot_dimension_numbers<[1], [0], [0], [1], [0, 0, 1, 1], [], []>} : vector<8x8xbf16>, vector<8x8xbf16>, vector<8x8xf32> -> vector<8x8xf32>
        %97 = tpu.reciprocal %94 {approx = true} : vector<8x1xf32> -> vector<8x1xf32>
        %98 = vector.broadcast %97 : vector<8x1xf32> to vector<8x8xf32>
        %99 = arith.mulf %96, %98 : vector<8x8xf32>
        %100 = vector.extract_strided_slice %79 {offsets = [0, 8], sizes = [8, 8], strides = [1, 1]} : vector<8x96xf32> to vector<8x8xf32>
        %101 = arith.truncf %100 : vector<8x8xf32> to vector<8x8xbf16>
        %102 = vector.extract_strided_slice %79 {offsets = [0, 40], sizes = [8, 8], strides = [1, 1]} : vector<8x96xf32> to vector<8x8xf32>
        %103 = arith.truncf %102 : vector<8x8xf32> to vector<8x8xbf16>
        %104 = vector.extract_strided_slice %79 {offsets = [0, 72], sizes = [8, 8], strides = [1, 1]} : vector<8x96xf32> to vector<8x8xf32>
        %105 = arith.truncf %104 : vector<8x8xf32> to vector<8x8xbf16>
        %cst_56 = arith.constant dense<0.000000e+00> : vector<8x8xf32>
        %106 = tpu.matmul %101, %103, %cst_56 {dimension_numbers = #tpu.dot_dimension_numbers<[1], [1], [0], [0], [0, 0, 1, 0], [], []>} : vector<8x8xbf16>, vector<8x8xbf16>, vector<8x8xf32> -> vector<8x8xf32>
        %107 = arith.addf %106, %27 : vector<8x8xf32>
        %cst_57 = arith.constant dense<0xFF800000> : vector<8xf32>
        %108 = vector.multi_reduction <maximumf>, %107, %cst_57 [1] : vector<8x8xf32> to vector<8xf32>
        %109 = vector.shape_cast %108 : vector<8xf32> to vector<8x1xf32>
        %110 = vector.broadcast %109 : vector<8x1xf32> to vector<8x8xf32>
        %111 = arith.subf %107, %110 : vector<8x8xf32>
        %112 = math.exp %111 : vector<8x8xf32>
        %cst_58 = arith.constant dense<0.000000e+00> : vector<8xf32>
        %113 = vector.multi_reduction <add>, %112, %cst_58 [1] : vector<8x8xf32> to vector<8xf32>
        %114 = vector.shape_cast %113 : vector<8xf32> to vector<8x1xf32>
        %115 = arith.truncf %112 : vector<8x8xf32> to vector<8x8xbf16>
        %cst_59 = arith.constant dense<0.000000e+00> : vector<8x8xf32>
        %116 = tpu.matmul %115, %105, %cst_59 {dimension_numbers = #tpu.dot_dimension_numbers<[1], [0], [0], [1], [0, 0, 1, 1], [], []>} : vector<8x8xbf16>, vector<8x8xbf16>, vector<8x8xf32> -> vector<8x8xf32>
        %117 = tpu.reciprocal %114 {approx = true} : vector<8x1xf32> -> vector<8x1xf32>
        %118 = vector.broadcast %117 : vector<8x1xf32> to vector<8x8xf32>
        %119 = arith.mulf %116, %118 : vector<8x8xf32>
        %120 = vector.extract_strided_slice %79 {offsets = [0, 16], sizes = [8, 8], strides = [1, 1]} : vector<8x96xf32> to vector<8x8xf32>
        %121 = arith.truncf %120 : vector<8x8xf32> to vector<8x8xbf16>
        %122 = vector.extract_strided_slice %79 {offsets = [0, 48], sizes = [8, 8], strides = [1, 1]} : vector<8x96xf32> to vector<8x8xf32>
        %123 = arith.truncf %122 : vector<8x8xf32> to vector<8x8xbf16>
        %124 = vector.extract_strided_slice %79 {offsets = [0, 80], sizes = [8, 8], strides = [1, 1]} : vector<8x96xf32> to vector<8x8xf32>
        %125 = arith.truncf %124 : vector<8x8xf32> to vector<8x8xbf16>
        %cst_60 = arith.constant dense<0.000000e+00> : vector<8x8xf32>
        %126 = tpu.matmul %121, %123, %cst_60 {dimension_numbers = #tpu.dot_dimension_numbers<[1], [1], [0], [0], [0, 0, 1, 0], [], []>} : vector<8x8xbf16>, vector<8x8xbf16>, vector<8x8xf32> -> vector<8x8xf32>
        %127 = arith.addf %126, %27 : vector<8x8xf32>
        %cst_61 = arith.constant dense<0xFF800000> : vector<8xf32>
        %128 = vector.multi_reduction <maximumf>, %127, %cst_61 [1] : vector<8x8xf32> to vector<8xf32>
        %129 = vector.shape_cast %128 : vector<8xf32> to vector<8x1xf32>
        %130 = vector.broadcast %129 : vector<8x1xf32> to vector<8x8xf32>
        %131 = arith.subf %127, %130 : vector<8x8xf32>
        %132 = math.exp %131 : vector<8x8xf32>
        %cst_62 = arith.constant dense<0.000000e+00> : vector<8xf32>
        %133 = vector.multi_reduction <add>, %132, %cst_62 [1] : vector<8x8xf32> to vector<8xf32>
        %134 = vector.shape_cast %133 : vector<8xf32> to vector<8x1xf32>
        %135 = arith.truncf %132 : vector<8x8xf32> to vector<8x8xbf16>
        %cst_63 = arith.constant dense<0.000000e+00> : vector<8x8xf32>
        %136 = tpu.matmul %135, %125, %cst_63 {dimension_numbers = #tpu.dot_dimension_numbers<[1], [0], [0], [1], [0, 0, 1, 1], [], []>} : vector<8x8xbf16>, vector<8x8xbf16>, vector<8x8xf32> -> vector<8x8xf32>
        %137 = tpu.reciprocal %134 {approx = true} : vector<8x1xf32> -> vector<8x1xf32>
        %138 = vector.broadcast %137 : vector<8x1xf32> to vector<8x8xf32>
        %139 = arith.mulf %136, %138 : vector<8x8xf32>
        %140 = vector.extract_strided_slice %79 {offsets = [0, 24], sizes = [8, 8], strides = [1, 1]} : vector<8x96xf32> to vector<8x8xf32>
        %141 = arith.truncf %140 : vector<8x8xf32> to vector<8x8xbf16>
        %142 = vector.extract_strided_slice %79 {offsets = [0, 56], sizes = [8, 8], strides = [1, 1]} : vector<8x96xf32> to vector<8x8xf32>
        %143 = arith.truncf %142 : vector<8x8xf32> to vector<8x8xbf16>
        %144 = vector.extract_strided_slice %79 {offsets = [0, 88], sizes = [8, 8], strides = [1, 1]} : vector<8x96xf32> to vector<8x8xf32>
        %145 = arith.truncf %144 : vector<8x8xf32> to vector<8x8xbf16>
        %cst_64 = arith.constant dense<0.000000e+00> : vector<8x8xf32>
        %146 = tpu.matmul %141, %143, %cst_64 {dimension_numbers = #tpu.dot_dimension_numbers<[1], [1], [0], [0], [0, 0, 1, 0], [], []>} : vector<8x8xbf16>, vector<8x8xbf16>, vector<8x8xf32> -> vector<8x8xf32>
        %147 = arith.addf %146, %27 : vector<8x8xf32>
        %cst_65 = arith.constant dense<0xFF800000> : vector<8xf32>
        %148 = vector.multi_reduction <maximumf>, %147, %cst_65 [1] : vector<8x8xf32> to vector<8xf32>
        %149 = vector.shape_cast %148 : vector<8xf32> to vector<8x1xf32>
        %150 = vector.broadcast %149 : vector<8x1xf32> to vector<8x8xf32>
        %151 = arith.subf %147, %150 : vector<8x8xf32>
        %152 = math.exp %151 : vector<8x8xf32>
        %cst_66 = arith.constant dense<0.000000e+00> : vector<8xf32>
        %153 = vector.multi_reduction <add>, %152, %cst_66 [1] : vector<8x8xf32> to vector<8xf32>
        %154 = vector.shape_cast %153 : vector<8xf32> to vector<8x1xf32>
        %155 = arith.truncf %152 : vector<8x8xf32> to vector<8x8xbf16>
        %cst_67 = arith.constant dense<0.000000e+00> : vector<8x8xf32>
        %156 = tpu.matmul %155, %145, %cst_67 {dimension_numbers = #tpu.dot_dimension_numbers<[1], [0], [0], [1], [0, 0, 1, 1], [], []>} : vector<8x8xbf16>, vector<8x8xbf16>, vector<8x8xf32> -> vector<8x8xf32>
        %157 = tpu.reciprocal %154 {approx = true} : vector<8x1xf32> -> vector<8x1xf32>
        %158 = vector.broadcast %157 : vector<8x1xf32> to vector<8x8xf32>
        %159 = arith.mulf %156, %158 : vector<8x8xf32>
        %160 = tpu.concatenate %99, %119, %139, %159 in 1 : vector<8x8xf32>, vector<8x8xf32>, vector<8x8xf32>, vector<8x8xf32> -> vector<8x32xf32>
        %161 = arith.truncf %160 : vector<8x32xf32> to vector<8x32xbf16>
        %cst_68 = arith.constant dense<0.000000e+00> : vector<8x32xf32>
        %162 = tpu.matmul %161, %12, %cst_68 {dimension_numbers = #tpu.dot_dimension_numbers<[1], [0], [0], [1], [0, 0, 1, 1], [], []>} : vector<8x32xbf16>, vector<32x32xbf16>, vector<8x32xf32> -> vector<8x32xf32>
        %163 = arith.addf %arg21, %162 : vector<8x32xf32>
        %164 = vector.broadcast %19 : vector<1x32xf32> to vector<8x32xf32>
        %165 = arith.addf %163, %164 : vector<8x32xf32>
        %cst_69 = arith.constant dense<0.000000e+00> : vector<8xf32>
        %166 = vector.multi_reduction <add>, %165, %cst_69 [1] : vector<8x32xf32> to vector<8xf32>
        %167 = vector.shape_cast %166 : vector<8xf32> to vector<8x1xf32>
        %cst_70 = arith.constant 3.200000e+01 : f32
        %168 = vector.broadcast %cst_70 : f32 to vector<8x1xf32>
        %169 = arith.divf %167, %168 : vector<8x1xf32>
        %170 = vector.broadcast %169 : vector<8x1xf32> to vector<8x32xf32>
        %171 = arith.subf %165, %170 : vector<8x32xf32>
        %172 = arith.mulf %171, %171 : vector<8x32xf32>
        %cst_71 = arith.constant dense<0.000000e+00> : vector<8xf32>
        %173 = vector.multi_reduction <add>, %172, %cst_71 [1] : vector<8x32xf32> to vector<8xf32>
        %174 = vector.shape_cast %173 : vector<8xf32> to vector<8x1xf32>
        %cst_72 = arith.constant 3.200000e+01 : f32
        %175 = vector.broadcast %cst_72 : f32 to vector<8x1xf32>
        %176 = arith.divf %174, %175 : vector<8x1xf32>
        %177 = vector.broadcast %169 : vector<8x1xf32> to vector<8x32xf32>
        %178 = arith.subf %165, %177 : vector<8x32xf32>
        %cst_73 = arith.constant 9.99999974E-6 : f32
        %179 = vector.broadcast %cst_73 : f32 to vector<8x1xf32>
        %180 = arith.addf %176, %179 : vector<8x1xf32>
        %181 = math.rsqrt %180 : vector<8x1xf32>
        %182 = vector.broadcast %181 : vector<8x1xf32> to vector<8x32xf32>
        %183 = arith.mulf %178, %182 : vector<8x32xf32>
        %184 = vector.broadcast %17 : vector<1x32xf32> to vector<8x32xf32>
        %185 = arith.mulf %183, %184 : vector<8x32xf32>
        %186 = vector.broadcast %18 : vector<1x32xf32> to vector<8x32xf32>
        %187 = arith.addf %185, %186 : vector<8x32xf32>
        %188 = arith.truncf %187 : vector<8x32xf32> to vector<8x32xbf16>
        %cst_74 = arith.constant dense<0.000000e+00> : vector<8x64xf32>
        %189 = tpu.matmul %188, %13, %cst_74 {dimension_numbers = #tpu.dot_dimension_numbers<[1], [0], [0], [1], [0, 0, 1, 1], [], []>} : vector<8x32xbf16>, vector<32x64xbf16>, vector<8x64xf32> -> vector<8x64xf32>
        %190 = vector.broadcast %20 : vector<1x64xf32> to vector<8x64xf32>
        %191 = arith.addf %189, %190 : vector<8x64xf32>
        %cst_75 = arith.constant 0.000000e+00 : f32
        %192 = vector.broadcast %cst_75 : f32 to vector<8x64xf32>
        %193 = arith.maximumf %191, %192 : vector<8x64xf32>
        %194 = arith.truncf %193 : vector<8x64xf32> to vector<8x64xbf16>
        %cst_76 = arith.constant dense<0.000000e+00> : vector<8x32xf32>
        %195 = tpu.matmul %194, %14, %cst_76 {dimension_numbers = #tpu.dot_dimension_numbers<[1], [0], [0], [1], [0, 0, 1, 1], [], []>} : vector<8x64xbf16>, vector<64x32xbf16>, vector<8x32xf32> -> vector<8x32xf32>
        %196 = vector.broadcast %21 : vector<1x32xf32> to vector<8x32xf32>
        %197 = arith.addf %195, %196 : vector<8x32xf32>
        %198 = arith.addf %165, %197 : vector<8x32xf32>
        scf.yield %198 : vector<8x32xf32>
      }
      %c0_35 = arith.constant 0 : index
      %c0_36 = arith.constant 0 : index
      %30 = vector.load %arg14[%c0_35, %c0_36] : memref<1x32xf32, #tpu.memory_space<vmem>>, vector<1x32xf32>
      %c0_37 = arith.constant 0 : index
      %c0_38 = arith.constant 0 : index
      %31 = vector.load %arg15[%c0_37, %c0_38] : memref<1x32xf32, #tpu.memory_space<vmem>>, vector<1x32xf32>
      %cst_39 = arith.constant dense<0.000000e+00> : vector<8xf32>
      %32 = vector.multi_reduction <add>, %29, %cst_39 [1] : vector<8x32xf32> to vector<8xf32>
      %33 = vector.shape_cast %32 : vector<8xf32> to vector<8x1xf32>
      %cst_40 = arith.constant 3.200000e+01 : f32
      %34 = vector.broadcast %cst_40 : f32 to vector<8x1xf32>
      %35 = arith.divf %33, %34 : vector<8x1xf32>
      %36 = vector.broadcast %35 : vector<8x1xf32> to vector<8x32xf32>
      %37 = arith.subf %29, %36 : vector<8x32xf32>
      %38 = arith.mulf %37, %37 : vector<8x32xf32>
      %cst_41 = arith.constant dense<0.000000e+00> : vector<8xf32>
      %39 = vector.multi_reduction <add>, %38, %cst_41 [1] : vector<8x32xf32> to vector<8xf32>
      %40 = vector.shape_cast %39 : vector<8xf32> to vector<8x1xf32>
      %cst_42 = arith.constant 3.200000e+01 : f32
      %41 = vector.broadcast %cst_42 : f32 to vector<8x1xf32>
      %42 = arith.divf %40, %41 : vector<8x1xf32>
      %43 = vector.broadcast %35 : vector<8x1xf32> to vector<8x32xf32>
      %44 = arith.subf %29, %43 : vector<8x32xf32>
      %cst_43 = arith.constant 9.99999974E-6 : f32
      %45 = vector.broadcast %cst_43 : f32 to vector<8x1xf32>
      %46 = arith.addf %42, %45 : vector<8x1xf32>
      %47 = math.rsqrt %46 : vector<8x1xf32>
      %48 = vector.broadcast %47 : vector<8x1xf32> to vector<8x32xf32>
      %49 = arith.mulf %44, %48 : vector<8x32xf32>
      %50 = vector.broadcast %30 : vector<1x32xf32> to vector<8x32xf32>
      %51 = arith.mulf %49, %50 : vector<8x32xf32>
      %52 = vector.broadcast %31 : vector<1x32xf32> to vector<8x32xf32>
      %53 = arith.addf %51, %52 : vector<8x32xf32>
      %54 = arith.truncf %53 : vector<8x32xf32> to vector<8x32xbf16>
      %c0_44 = arith.constant 0 : index
      %c0_45 = arith.constant 0 : index
      %55 = vector.load %arg19[%c0_44, %c0_45] : memref<8x32xbf16, #tpu.memory_space<vmem>>, vector<8x32xbf16>
      tpu.vector_store %arg19[%c0_44, %c0_45], %54 {strides = array<i32>} : memref<8x32xbf16, #tpu.memory_space<vmem>>, vector<8x32xbf16>,
    } else {
    }
    %c0 = arith.constant 0 : index
    %c0_1 = arith.constant 0 : index
    %3 = vector.load %arg19[%c0, %c0_1] : memref<8x32xbf16, #tpu.memory_space<vmem>>, vector<8x32xbf16>
    %c0_2 = arith.constant 0 : index
    %c0_3 = arith.constant 0 : index
    %4 = vector.load %arg16[%c0_2, %c0_3] : memref<32x128xbf16, #tpu.memory_space<vmem>>, vector<32x128xbf16>
    %cst = arith.constant dense<0.000000e+00> : vector<8x128xf32>
    %5 = tpu.matmul %3, %4, %cst {dimension_numbers = #tpu.dot_dimension_numbers<[1], [0], [0], [1], [0, 0, 1, 1], [], []>} : vector<8x32xbf16>, vector<32x128xbf16>, vector<8x128xf32> -> vector<8x128xf32>
    %c0_4 = arith.constant 0 : index
    %c0_5 = arith.constant 0 : index
    %6 = vector.load %arg17[%c0_4, %c0_5] : memref<1x128xf32, #tpu.memory_space<vmem>>, vector<1x128xf32>
    %7 = vector.broadcast %6 : vector<1x128xf32> to vector<8x128xf32>
    %8 = arith.addf %5, %7 : vector<8x128xf32>
    %c0_6 = arith.constant 0 : index
    %c0_7 = arith.constant 0 : index
    %9 = vector.load %arg18[%c0_6, %c0_7] : memref<8x128xf32, #tpu.memory_space<vmem>>, vector<8x128xf32>
    tpu.vector_store %arg18[%c0_6, %c0_7], %8 {strides = array<i32>} : memref<8x128xf32, #tpu.memory_space<vmem>>, vector<8x128xf32>,
    return
  }
  func.func @transform_0(%arg0: i32, %arg1: i32) -> (i32, i32) {
    %c0_i32 = arith.constant 0 : i32
    %c0_i32_0 = arith.constant 0 : i32
    return %arg0, %c0_i32 : i32, i32
  }
  func.func @transform_1(%arg0: i32, %arg1: i32) -> (i32, i32) {
    %c0_i32 = arith.constant 0 : i32
    %c0_i32_0 = arith.constant 0 : i32
    %c0_i32_1 = arith.constant 0 : i32
    return %c0_i32, %c0_i32_0 : i32, i32
  }
  func.func @transform_2(%arg0: i32, %arg1: i32) -> (i32, i32) {
    %c0_i32 = arith.constant 0 : i32
    %c0_i32_0 = arith.constant 0 : i32
    %c0_i32_1 = arith.constant 0 : i32
    return %c0_i32, %c0_i32_0 : i32, i32
  }
  func.func @transform_3(%arg0: i32, %arg1: i32) -> (i32, i32) {
    %c0_i32 = arith.constant 0 : i32
    %c0_i32_0 = arith.constant 0 : i32
    %c0_i32_1 = arith.constant 0 : i32
    return %c0_i32, %c0_i32_0 : i32, i32
  }
  func.func @transform_4(%arg0: i32, %arg1: i32) -> (i32, i32) {
    %c0_i32 = arith.constant 0 : i32
    %c0_i32_0 = arith.constant 0 : i32
    %c0_i32_1 = arith.constant 0 : i32
    return %c0_i32, %c0_i32_0 : i32, i32
  }
  func.func @transform_5(%arg0: i32, %arg1: i32) -> (i32, i32) {
    %c0_i32 = arith.constant 0 : i32
    %c0_i32_0 = arith.constant 0 : i32
    %c0_i32_1 = arith.constant 0 : i32
    return %c0_i32, %c0_i32_0 : i32, i32
  }
  func.func @transform_6(%arg0: i32, %arg1: i32) -> (i32, i32) {
    %c0_i32 = arith.constant 0 : i32
    %c0_i32_0 = arith.constant 0 : i32
    %c0_i32_1 = arith.constant 0 : i32
    return %c0_i32, %c0_i32_0 : i32, i32
  }
  func.func @transform_7(%arg0: i32, %arg1: i32) -> (i32, i32) {
    %c0_i32 = arith.constant 0 : i32
    %c0_i32_0 = arith.constant 0 : i32
    %c0_i32_1 = arith.constant 0 : i32
    return %c0_i32, %c0_i32_0 : i32, i32
  }
  func.func @transform_8(%arg0: i32, %arg1: i32) -> (i32, i32) {
    %c0_i32 = arith.constant 0 : i32
    %c0_i32_0 = arith.constant 0 : i32
    %c0_i32_1 = arith.constant 0 : i32
    return %c0_i32, %c0_i32_0 : i32, i32
  }
  func.func @transform_9(%arg0: i32, %arg1: i32) -> (i32, i32) {
    %c0_i32 = arith.constant 0 : i32
    %c0_i32_0 = arith.constant 0 : i32
    %c0_i32_1 = arith.constant 0 : i32
    return %c0_i32, %c0_i32_0 : i32, i32
  }
  func.func @transform_10(%arg0: i32, %arg1: i32) -> (i32, i32) {
    %c0_i32 = arith.constant 0 : i32
    %c0_i32_0 = arith.constant 0 : i32
    %c0_i32_1 = arith.constant 0 : i32
    return %c0_i32, %c0_i32_0 : i32, i32
  }
  func.func @transform_11(%arg0: i32, %arg1: i32) -> (i32, i32) {
    %c0_i32 = arith.constant 0 : i32
    %c0_i32_0 = arith.constant 0 : i32
    %c0_i32_1 = arith.constant 0 : i32
    return %c0_i32, %c0_i32_0 : i32, i32
  }
  func.func @transform_12(%arg0: i32, %arg1: i32) -> (i32, i32) {
    %c0_i32 = arith.constant 0 : i32
    %c0_i32_0 = arith.constant 0 : i32
    %c0_i32_1 = arith.constant 0 : i32
    return %c0_i32, %c0_i32_0 : i32, i32
  }
  func.func @transform_13(%arg0: i32, %arg1: i32) -> (i32, i32) {
    %c0_i32 = arith.constant 0 : i32
    %c0_i32_0 = arith.constant 0 : i32
    %c0_i32_1 = arith.constant 0 : i32
    return %c0_i32, %c0_i32_0 : i32, i32
  }
  func.func @transform_14(%arg0: i32, %arg1: i32) -> (i32, i32) {
    %c0_i32 = arith.constant 0 : i32
    %c0_i32_0 = arith.constant 0 : i32
    return %c0_i32, %arg1 : i32, i32
  }
  func.func @transform_15(%arg0: i32, %arg1: i32) -> (i32, i32) {
    %c0_i32 = arith.constant 0 : i32
    %c0_i32_0 = arith.constant 0 : i32
    return %c0_i32, %arg1 : i32, i32
  }
  func.func @transform_16(%arg0: i32, %arg1: i32) -> (i32, i32) {
    %c0_i32 = arith.constant 0 : i32
    return %arg0, %arg1 : i32, i32
  }
}

</mosaic_0001>

<bundles_post_ra>
// kernel: transformer_fixed_lookahead_forward.1
= control target key start
LH: loop header
LB: loop body
LE: loop exit
PB: predicated region body
PF: predicated region fallthrough
CT: control target
= control target key end

     0   :  { %s1564_s21 = smov 0   ;;  %s1566_s22 = smov 0   ;;  %s1858_s0 = inlined_call_operand.vmem [shape: f32[16,32], index: 0, kind: input, shape index: {}]   ;;  %s1859_s1 = inlined_call_operand.vmem [shape: bf16[32,96], index: 1, kind: input, shape index: {}]   ;;  %s1860_s2 = inlined_call_operand.vmem [shape: bf16[32,32], index: 2, kind: input, shape index: {}]   ;;  %s1861_s3 = inlined_call_operand.vmem [shape: f32[1,32], index: 3, kind: input, shape index: {}]   ;;  %s1862_s4 = inlined_call_operand.vmem [shape: f32[1,32], index: 4, kind: input, shape index: {}]   ;;  %s1863_s5 = inlined_call_operand.vmem [shape: f32[1,32], index: 5, kind: input, shape index: {}]   ;;  %s1864_s6 = inlined_call_operand.vmem [shape: f32[1,32], index: 6, kind: input, shape index: {}]   ;;  %s1865_s7 = inlined_call_operand.vmem [shape: f32[1,32], index: 7, kind: input, shape index: {}]   ;;  %s1866_s8 = inlined_call_operand.vmem [shape: bf16[32,64], index: 8, kind: input, shape index: {}]   ;;  %s1867_s9 = inlined_call_operand.vmem [shape: f32[1,64], index: 9, kind: input, shape index: {}]   ;;  %s1868_s10 = inlined_call_operand.vmem [shape: bf16[64,32], index: 10, kind: input, shape index: {}]   ;;  %s1869_s11 = inlined_call_operand.vmem [shape: f32[1,32], index: 11, kind: input, shape index: {}]   ;;  %s1870_s12 = inlined_call_operand.vmem [shape: f32[1,32], index: 12, kind: input, shape index: {}]   ;;  %s1871_s13 = inlined_call_operand.vmem [shape: f32[1,32], index: 13, kind: input, shape index: {}]   ;;  %s1872_s14 = inlined_call_operand.vmem [shape: bf16[32,128], index: 14, kind: input, shape index: {}]   ;;  %s1873_s15 = inlined_call_operand.vmem [shape: f32[1,128], index: 15, kind: input, shape index: {}]   ;;  %s1874_s16 = inlined_call_operand.vmem [shape: f32[16,128], index: 16, kind: output, shape index: {}]  }
   0x1   :  { %1875 = sst [smem:[#allocation3_spill]] %s1858_s0  ;;  %s1568_s23 = smov 0  }
   0x2   :  { %1876 = sst [smem:[#allocation4_spill]] %s1859_s1 }
   0x3   :  { %1877 = sst [smem:[#allocation5_spill]] %s1860_s2 }
   0x4 LB: > { %s38_s24 = sadd.s32 1, %s1449_s22  ;;  %p1262_p0 = scmp.ge.s32.totalorder %s1453_s23, 1  ;;  %s1453_s23 = sphi %s1568_s23, %s26_s23   ;;  %s1449_s22 = sphi %s1566_s22, %s1883_s22   ;;  %s1445_s21 = sphi %s1564_s21, %s1882_s21  }
   0x5   : > { %p40_p1 = scmp.ge.s32.totalorder %s38_s24, 2  ;;  %p492_p2 = scmp.lt.s32.totalorder %s1453_s23, 3 }
   0x7   : > { %s1885_s24 = smov (%p40_p1, %s38_s24), 0  ;;  %p493_p3 = pnand %p1262_p0, %p492_p2 }
   0x8   : > { %p550_p4 = scmp.lt.s32.totalorder (!%p493_p3), %s1445_s21, 1  ;;  %s1878_s1 = sld [smem:[#allocation4_spill]] (!%p493_p3) }
   0x9   : > { %496 = sbr.rel (%p493_p3) target bundleno = 2182 (0x886), region = 84  ;;  %s1879_s2 = sld [smem:[#allocation5_spill]] (!%p493_p3) }
   0xa   : > { %s1880_s30 = sld [smem:[#allocation3_spill]] (!%p493_p3)  ;;  %s1729_s26 = smov (!%p493_p3), 0  }
   0xe   : > { %v1585_v0 = vld [vmem:[%s1878_s1] sm:$0xf]  ;;  %v1590_v1 = vld [vmem:[%s1878_s1] sm:$0xf0]  ;;  %v601_v2 = vlaneseq  ;;  %v1595_v3 = vld [vmem:[%s1878_s1 + $0x8] sm:$0xf] }
   0xf   : > { %v1600_v4 = vld [vmem:[%s1878_s1 + $0x8] sm:$0xf0]  ;;  %v1605_v5 = vld [vmem:[%s1879_s2] sm:$0xf]  ;;  %s1887_s21 = smov (!%p550_p4, %s1445_s21), 1 }
  0x10   : > { %v1610_v6 = vld [vmem:[%s1879_s2] sm:$0xf0]  ;;  %v1615_v7 = vld [vmem:[%s1879_s2 + $0x8] sm:$0xf]  ;;  %v602_v8 = vshrl.u32 %v601_v2, 7  ;;  %s1263_s19 = sshll.u32 %s1887_s21, 3 }
  0x11   : > { %v1620_v9 = vld [vmem:[%s1879_s2 + $0x8] sm:$0xf0]  ;;  %v1625_v10 = vld [vmem:[%s1866_s8] sm:$0xf]  ;;  %v1630_v11 = vld [vmem:[%s1866_s8] sm:$0xf0]  ;;  %s553_s0 = scalar_lea.vmem %s1880_s30, %s1263_s19  ;;  %s1648_s18 = scalar_lea.vmem %s1874_s16, %s1263_s19 }
  0x12   : > { %v1635_v12 = vld [vmem:[%s1866_s8 + $0x8] sm:$0xf]  ;;  %v1640_v13 = vld [vmem:[%s1866_s8 + $0x8] sm:$0xf0]  ;;  %v604_v14 = vand.u32 127, %v601_v2  ;;  %v573_v18 = vld [vmem:[%s553_s0] sm:$0xff]  }
  0x13   : > { %v1653_v15 = vld [vmem:[%s1868_s10] sm:$0xf]  ;;  %v1658_v16 = vld [vmem:[%s1868_s10] sm:$0xf0]  ;;  %v1663_v17 = vld [vmem:[%s1868_s10 + $0x8] sm:$0xf] }
  0x14   : > { %v1668_v19 = vld [vmem:[%s1868_s10 + $0x8] sm:$0xf0]  ;;  %v1673_v20 = vld [vmem:[%s1868_s10 + $0x10] sm:$0xf]  ;;  %v1678_v21 = vld [vmem:[%s1868_s10 + $0x10] sm:$0xf0]  ;;  %vm605_vm0 = vcmp.le.s32.totalorder %v604_v14, %v602_v8 }
  0x15   : > { %v1683_v22 = vld [vmem:[%s1868_s10 + $0x18] sm:$0xf]  ;;  %v1688_v23 = vld [vmem:[%s1868_s10 + $0x18] sm:$0xf0]  ;;  %v1693_v24 = vld [vmem:[%s1862_s4] sm:$0x1] }
  0x16   : > { %v1698_v25 = vld [vmem:[%s1863_s5] sm:$0x1]  ;;  %v1463_v31 = vmov -1e+30  }
  0x17   : > { %v1703_v26 = vld [vmem:[%s1864_s6] sm:$0x1]  ;;  %v1725_v32 = vsel %vm605_vm0, 0.0, %v1463_v31 }
  0x18   : > { %v1708_v27 = vld [vmem:[%s1865_s7] sm:$0x1] }
  0x19   : > { %v1713_v28 = vld [vmem:[%s1861_s3] sm:$0x1] }
  0x1a   : > { %v1718_v29 = vld [vmem:[%s1867_s9] sm:$0x1] }
  0x1b   : > { %v1723_v30 = vld [vmem:[%s1869_s11] sm:$0x1] }
  0x1c LB: >> { %vm614_vm1 = vcmask 261120   ;;  %v1464_v34 = vmov 32.0   ;;  %v1272_v46 = vor.u32 %v1600_v4, %v1595_v3  ;;  %v1268_v47 = vor.u32 %v1590_v1, %v1585_v0  ;;  %s1465_s27 = smov 104   ;;  %s1466_s28 = smov 120   ;;  %s1461_s26 = sphi %s1729_s26, %s612_s26   ;;  %v1457_v18 = vphi %v573_v18, %v1881_v18  }
  0x1d   : >> { %v615_v33 = vsel %vm614_vm1, %v1457_v18, 0.0  ;;  %1396 = vrcp.f32 %v1464_v34  ;;  %v645_v57 = vperm.slane %v1693_v24, 0  ;;  %v649_v60 = vperm.slane %v1698_v25, 0  ;;  %s1467_s1 = smov 96   ;;  %s1468_s19 = smov 56  }
  0x1e   : >> { %616 = vadd.xlane.f32.xlu0 %v615_v33  ;;  %674 = vmatpush.bf16.msra.mxu0 %v1272_v46  ;;  %s1469_s2 = smov 72   ;;  %s1470_s29 = smov 88   ;;  %vm720_vm6 = vcmask 1043456   ;;  %vm685_vm7 = vcmask 64512   ;;  %vm920_vm8 = vcmask 130048   ;;  %vm922_vm9 = vcmask 195584  }
  0x1f   : >> { %s1471_s30 = smov 112   ;;  %s1472_s17 = smov 80   ;;  %vm1049_vm13 = vcmask 523264  }
  0x20   : >> { %s1473_s21 = smov 64   ;;  %s1474_s0 = smov 40  }
  0x21   : >> { %s1475_s20 = smov 48   ;;  %s1476_s25 = smov 16  }
  0x22   : >> { %675 = vmatpush.bf16.msra.mxu0 %v1268_v47  ;;  %s612_s26 = sadd.s32 1, %s1461_s26  }
  0x23   : >> { %v1397_v35 = vpop.eup %1396  ;;  %p609_p5 = scmp.ge.s32.totalorder %s612_s26, 2  }
  0x24   : >> { %v619_v36 = vmul.f32 32.0, %v1397_v35  ;;  %vm623_vm2 = vweird.f32 %v1397_v35  ;;  %v1338_v0 = vld [vmem:[%s1872_s14] sm:$0xff] (%p609_p5) }
  0x26   : >> { %v620_v37 = vsub.f32 1.0, %v619_v36 }
  0x28   : >> { %v621_v38 = vmul.f32 %v1397_v35, %v620_v37 }
  0x2a   : >> { %v622_v39 = vadd.f32 %v1397_v35, %v621_v38 }
  0x2c   : >> { %v1739_v40 = vsel %vm623_vm2, %v1397_v35, %v622_v39  ;;  %vm1108_vm2 = vcmask (%p609_p5), 257024  }
  0x91   : >> { %v617_v41 = vpop.xlane.xlu0 %616 }
  0x92   : >> { %v625_v42 = vmul.f32 %v1739_v40, %v617_v41 }
  0x94   : >> { %v626_v43 = vsub.f32 %v1457_v18, %v625_v42 }
  0x96   : >> { %v627_v44 = vmul.f32 %v626_v43, %v626_v43 }
  0x98   : >> { %v628_v45 = vsel %vm614_vm1, %v627_v44, 0.0 }
  0x99   : >> { %629 = vadd.xlane.f32.xlu0 %v628_v45 }
 0x10c   : >> { %v630_v48 = vpop.xlane.xlu0 %629 }
 0x10d   : >> { %v631_v49 = vmul.f32 %v630_v48, %v1739_v40 }
 0x10f   : >> { %v632_v50 = vadd.f32 1e-05, %v631_v49 }
 0x111   : >> { %1398 = vrsqrt.f32 %v632_v50  ;;  %vm639_vm4 = vweird.f32 %v632_v50 }
 0x117   : >> { %v1399_v51 = vpop.eup %1398 }
 0x118   : >> { %v634_v52 = vmul.f32 %v1399_v51, %v632_v50  ;;  %vm640_vm3 = vweird.f32 %v1399_v51 }
 0x119   : >> { %vm641_vm5 = vmor %vm639_vm4, %vm640_vm3 }
 0x11a   : >> { %v635_v53 = vmul.f32 %v1399_v51, %v634_v52 }
 0x11c   : >> { %v636_v54 = vmul.f32 0.5, %v635_v53 }
 0x11e   : >> { %v637_v55 = vsub.f32 1.5, %v636_v54 }
 0x120   : >> { %v638_v56 = vmul.f32 %v1399_v51, %v637_v55 }
 0x122   : >> { %v642_v58 = vsel %vm641_vm5, %v1399_v51, %v638_v56 }
 0x123   : >> { %v643_v59 = vmul.f32 %v642_v58, %v626_v43 }
 0x125   : >> { %v647_v61 = vmul.f32 %v645_v57, %v643_v59 }
 0x127   : >> { %v651_v62 = vadd.f32 %v649_v60, %v647_v61 }
 0x129   : >> { %v652_v63 = vpack.c.bf16 %v651_v62, %v651_v62 }
 0x12b   : >> { %1273 = vmatmul.msk.bf16.vlgmr.msra.gmra.mxu0 %vm614_vm1, %v652_v63 }
 0x1a8   : >> { %v677_v2 = vpop.f32.mrf.mxu0 }
 0x1a9   : >> { %v1752_v8 = vpack.c.bf16 %v677_v2, %v677_v2 }
 0x1ab   : >> { %851 = vrot.lane.b32.xlu0 %v1752_v8, %s1465_s27  ;;  %739 = vrot.lane.b32.xlu2 %v1752_v8, %s1466_s28  ;;  %s1477_s27 = smov 8   ;;  %s1478_s28 = smov 24  }
 0x1ac   : >> { %683 = vrot.lane.b32.xlu1 %v1752_v8, %s1467_s1 }
 0x1b0   : >> { %v679_v14 = vpop.f32.mrf.mxu0 }
 0x1b3   : >> { %772 = vrot.lane.b32.xlu0 %v1752_v8, %s1468_s19  ;;  %853 = vrot.lane.b32.xlu2 %v1752_v8, %s1469_s2 }
 0x1b4   : >> { %741 = vrot.lane.b32.xlu1 %v1752_v8, %s1470_s29 }
 0x1bb   : >> { %795 = vrot.lane.b32.xlu2 %v1752_v8, %s1471_s30 }
 0x1bc   : >> { %797 = vrot.lane.b32.xlu1 %v1752_v8, %s1472_s17 }
 0x1c3   : >> { %715 = vrot.lane.b32.xlu2 %v1752_v8, %s1473_s21 }
 0x205   : >> { %v740_v31 = vpop.permute.xlu2 %739 }
 0x20d   : >> { %v854_v33 = vpop.permute.xlu2 %853 }
 0x20e   : >> { %v859_v45 = vsel %vm685_vm7, %v854_v33, 0 }
 0x215   : >> { %v796_v34 = vpop.permute.xlu2 %795 }
 0x21d   : >> { %v852_v35 = vpop.permute.xlu0 %851  ;;  %v716_v36 = vpop.permute.xlu2 %715 }
 0x21e   : >> { %v684_v37 = vpop.permute.xlu1 %683  ;;  %v722_v38 = vsel %vm720_vm6, %v716_v36, 0 }
 0x21f   : >> { %v690_v39 = vsel %vm685_vm7, %v684_v37, 0  ;;  %731 = vmatpush.bf16.msra.mxu2 %v722_v38 }
 0x220   : >> { %699 = vmatpush.bf16.xpose.msra.mxu1 %v690_v39 }
 0x225   : >> { %v773_v41 = vpop.permute.xlu0 %772 }
 0x226   : >> { %v742_v42 = vpop.permute.xlu1 %741  ;;  %v778_v43 = vsel %vm720_vm6, %v773_v41, 0 }
 0x227   : >> { %1274 = vmatmul.msk.bf16.vlgmr.msra.gmra.mxu1 %vm685_vm7, %v1752_v8  ;;  %v747_v44 = vsel %vm685_vm7, %v742_v42, 0  ;;  %787 = vmatpush.bf16.msrb.mxu2 %v778_v43 }
 0x228   : >> { %756 = vmatpush.bf16.xpose.msra.mxu3 %v747_v44 }
 0x22e   : >> { %v798_v46 = vpop.permute.xlu1 %797 }
 0x22f   : >> { %1276 = vmatmul.msk.bf16.vlgmr.msra.gmra.mxu3 %vm685_vm7, %v740_v31  ;;  %v803_v47 = vsel %vm685_vm7, %v798_v46, 0 }
 0x230   : >> { %868 = vmatpush.bf16.xpose.msrb.mxu3 %v859_v45  ;;  %812 = vmatpush.bf16.xpose.msrb.mxu0 %v803_v47 }
 0x237   : >> { %1278 = vmatmul.msk.bf16.vlgmr.msrb.gmra.mxu0 %vm685_vm7, %v796_v34 }
 0x23f   : >> { %1280 = vmatmul.msk.bf16.vlgmr.msrb.gmra.mxu3 %vm685_vm7, %v852_v35 }
 0x2a4   : >> { %v701_v48 = vpop.f32.mrf.mxu1 }
 0x2a5   : >> { %v702_v49 = vadd.f32 %v701_v48, %v1725_v32 }
 0x2a7   : >> { %v705_v50 = vsel %vm685_vm7, %v702_v49, -inf }
 0x2a8   : >> { %706 = vmax.xlane.f32.xlu1 %v705_v50 }
 0x2ac   : >> { %v703_v51 = vpop.f32.mrf.mxu1 }
 0x2b2   : >> { %v758_v52 = vpop.f32.mrf.mxu3 }
 0x2b3   : >> { %v759_v53 = vadd.f32 %v758_v52, %v1725_v32 }
 0x2b4   : >> { %v814_v54 = vpop.f32.mrf.mxu0 }
 0x2b5   : >> { %v815_v55 = vadd.f32 %v814_v54, %v1725_v32  ;;  %v762_v56 = vsel %vm685_vm7, %v759_v53, -inf }
 0x2b6   : >> { %763 = vmax.xlane.f32.xlu2 %v762_v56 }
 0x2b7   : >> { %v818_v57 = vsel %vm685_vm7, %v815_v55, -inf }
 0x2b8   : >> { %819 = vmax.xlane.f32.xlu1 %v818_v57 }
 0x2ba   : >> { %v760_v58 = vpop.f32.mrf.mxu3 }
 0x2bc   : >> { %v816_v59 = vpop.f32.mrf.mxu0 }
 0x2c2   : >> { %v870_v60 = vpop.f32.mrf.mxu3 }
 0x2c3   : >> { %v871_v61 = vadd.f32 %v870_v60, %v1725_v32 }
 0x2c5   : >> { %v874_v62 = vsel %vm685_vm7, %v871_v61, -inf }
 0x2c6   : >> { %875 = vmax.xlane.f32.xlu0 %v874_v62 }
 0x2ca   : >> { %v872_v63 = vpop.f32.mrf.mxu3 }
 0x2ce   : >> { %884 = vrot.lane.b32.xlu2 %v1752_v8, %s1474_s0 }
 0x2d1   : >> { %828 = vrot.lane.b32.xlu1 %v1752_v8, %s1475_s20 }
 0x31b   : >> { %v707_v2 = vpop.xlane.xlu1 %706 }
 0x31c   : >> { %v708_v14 = vsub.f32 %v702_v49, %v707_v2 }
 0x31e   : >> { %v709_v31 = vmul.f32 1.442695, %v708_v14 }
 0x320   : >> { %1400 = vpow2.f32 %v709_v31 }
 0x326   : >> { %v1401_v33 = vpop.eup %1400 }
 0x327   : >> { %v711_v34 = vsel %vm685_vm7, %v1401_v33, 0.0  ;;  %v714_v35 = vpack.c.bf16 %v1401_v33, %v1401_v33 }
 0x328   : >> { %712 = vadd.xlane.f32.xlu1 %v711_v34 }
 0x329   : >> { %v764_v36 = vpop.xlane.xlu2 %763  ;;  %1275 = vmatmul.msk.bf16.vlgmr.msra.gmra.mxu2 %vm685_vm7, %v714_v35 }
 0x32a   : >> { %v765_v37 = vsub.f32 %v759_v53, %v764_v36 }
 0x32b   : >> { %v820_v38 = vpop.xlane.xlu1 %819 }
 0x32c   : >> { %v766_v39 = vmul.f32 1.442695, %v765_v37  ;;  %v821_v41 = vsub.f32 %v815_v55, %v820_v38 }
 0x32e   : >> { %1402 = vpow2.f32 %v766_v39  ;;  %v822_v42 = vmul.f32 1.442695, %v821_v41 }
 0x330   : >> { %1404 = vpow2.f32 %v822_v42  ;;  %v1289_v42 = vor.u32 %v1620_v9, %v1615_v7 }
 0x331   : >> { %v885_v8 = vpop.permute.xlu2 %884 }
 0x332   : >> { %v890_v43 = vsel %vm720_vm6, %v885_v8, 0  ;;  %946 = vmatpush.bf16.msra.mxu0 %v1289_v42  ;;  %v1285_v8 = vor.u32 %v1610_v6, %v1605_v5 }
 0x333   : >> { %899 = vmatpush.bf16.msra.mxu2 %v890_v43 }
 0x334   : >> { %v1403_v44 = vpop.eup %1402 }
 0x335   : >> { %v771_v47 = vpack.c.bf16 %v1403_v44, %v1403_v44  ;;  %v768_v51 = vsel %vm685_vm7, %v1403_v44, 0.0 }
 0x336   : >> { %v1405_v45 = vpop.eup %1404  ;;  %947 = vmatpush.bf16.msra.mxu0 %v1285_v8  ;;  %v981_v8 = vperm.slane %v1703_v26, 0 }
 0x337   : >> { %v824_v46 = vsel %vm685_vm7, %v1405_v45, 0.0  ;;  %v827_v56 = vpack.c.bf16 %v1405_v45, %v1405_v45 }
 0x338   : >> { %825 = vadd.xlane.f32.xlu0 %v824_v46 }
 0x339   : >> { %v876_v48 = vpop.xlane.xlu0 %875  ;;  %1277 = vmatmul.msk.bf16.vlgmr.msrb.gmra.mxu2 %vm685_vm7, %v771_v47 }
 0x33a   : >> { %v877_v49 = vsub.f32 %v871_v61, %v876_v48 }
 0x33c   : >> { %v878_v50 = vmul.f32 1.442695, %v877_v49 }
 0x33e   : >> { %1406 = vpow2.f32 %v878_v50 }
 0x340   : >> { %769 = vadd.xlane.f32.xlu0 %v768_v51 }
 0x343   : >> { %v829_v52 = vpop.permute.xlu1 %828 }
 0x344   : >> { %v1407_v53 = vpop.eup %1406  ;;  %v834_v54 = vsel %vm720_vm6, %v829_v52, 0 }
 0x345   : >> { %843 = vmatpush.bf16.msrb.mxu1 %v834_v54  ;;  %v880_v55 = vsel %vm685_vm7, %v1407_v53, 0.0  ;;  %v883_v57 = vpack.c.bf16 %v1407_v53, %v1407_v53  ;;  %v955_v53 = vperm.slane %v1713_v28, 0 }
 0x346   : >> { %881 = vadd.xlane.f32.xlu2 %v880_v55 }
 0x348   : >> { %1279 = vmatmul.msk.bf16.vlgmr.msrb.gmra.mxu1 %vm685_vm7, %v827_v56 }
 0x349   : >> { %1281 = vmatmul.msk.bf16.vlgmr.msra.gmra.mxu2 %vm685_vm7, %v883_v57 }
 0x39b   : >> { %v713_v44 = vpop.xlane.xlu1 %712 }
 0x3ab   : >> { %v826_v60 = vpop.xlane.xlu0 %825 }
 0x3ac   : >> { %v733_v58 = vpop.f32.mrf.mxu2  ;;  %1408 = vrcp.f32 %v826_v60 }
 0x3b2   : >> { %v1409_v2 = vpop.eup %1408 }
 0x3b3   : >> { %v770_v62 = vpop.xlane.xlu0 %769 }
 0x3b4   : >> { %v735_v59 = vpop.f32.mrf.mxu2  ;;  %1410 = vrcp.f32 %v770_v62 }
 0x3b9   : >> { %v882_v33 = vpop.xlane.xlu2 %881 }
 0x3ba   : >> { %v1411_v35 = vpop.eup %1410  ;;  %1412 = vrcp.f32 %v882_v33 }
 0x3bb   : >> { %1414 = vrcp.f32 %v713_v44 }
 0x3bc   : >> { %v789_v61 = vpop.f32.mrf.mxu2 }
 0x3bd   : >> { %v794_v37 = vmul.f32 %v1411_v35, %v789_v61 }
 0x3c0   : >> { %v1413_v39 = vpop.eup %1412 }
 0x3c1   : >> { %v1415_v46 = vpop.eup %1414 }
 0x3c2   : >> { %v738_v47 = vmul.f32 %v1415_v46, %v733_v58 }
 0x3c4   : >> { %v791_v63 = vpop.f32.mrf.mxu2 }
 0x3c5   : >> { %v845_v14 = vpop.f32.mrf.mxu1 }
 0x3c6   : >> { %v850_v31 = vmul.f32 %v1409_v2, %v845_v14  ;;  %v1298_v2 = vor.u32 %v1640_v13, %v1635_v12  ;;  %v1315_v14 = vor.u32 %v1688_v23, %v1683_v22 }
 0x3c8   : >> { %912 = vrot.lane.b32.xlu0 %v850_v31, %s1476_s25  ;;  %1013 = vmatpush.bf16.msra.mxu1 %v1298_v2 }
 0x3c9   : >> { %1057 = vmatpush.bf16.msra.mxu3 %v1315_v14 }
 0x3cc   : >> { %v901_v34 = vpop.f32.mrf.mxu2 }
 0x3cd   : >> { %v847_v36 = vpop.f32.mrf.mxu1  ;;  %v906_v41 = vmul.f32 %v1413_v39, %v901_v34  ;;  %v1311_v34 = vor.u32 %v1678_v21, %v1673_v20  ;;  %v1420_v21 = vld [vmem:[%s1873_s15] ss:$0 sm:$0xff] (%p609_p5) }
 0x3cf   : >> { %1058 = vmatpush.bf16.msra.mxu3 %v1311_v34 }
 0x3d0   : >> { %908 = vrot.lane.b32.xlu0 %v794_v37, %s1477_s27 }
 0x3d4   : >> { %v903_v38 = vpop.f32.mrf.mxu2 }
 0x3d8   : >> { %916 = vrot.lane.b32.xlu0 %v906_v41, %s1478_s28 }
 0x43a   : >> { %v913_v43 = vpop.permute.xlu0 %912 }
 0x442   : >> { %v909_v45 = vpop.permute.xlu0 %908 }
 0x443   : >> { %v919_v48 = vsel %vm685_vm7, %v738_v47, %v909_v45  ;;  %v985_v45 = vperm.slane %v1708_v27, 0 }
 0x444   : >> { %v921_v50 = vsel %vm920_vm8, %v919_v48, %v913_v43 }
 0x44a   : >> { %v917_v49 = vpop.permute.xlu0 %916 }
 0x44b   : >> { %v923_v51 = vsel %vm922_vm9, %v921_v50, %v917_v49  ;;  %v1307_v49 = vor.u32 %v1668_v19, %v1663_v17  ;;  %v1303_v50 = vor.u32 %v1658_v16, %v1653_v15  ;;  %v1419_v15 = vld [vmem:[%s1871_s13] ss:$0 sm:$0xff] (%p609_p5) }
 0x44c   : >> { %v924_v52 = vpack.c.bf16 %v923_v51, %v923_v51  ;;  %v990_v51 = vperm.slane %v1718_v29, 0 }
 0x44d   : >> { %1059 = vmatpush.bf16.msra.mxu3 %v1307_v49 }
 0x44e   : >> { %1290 = vmatmul.msk.bf16.vlgmr.msra.gmra.mxu0 %vm614_vm1, %v924_v52 }
 0x451   : >> { %1060 = vmatpush.bf16.msra.mxu3 %v1303_v50 }
 0x4cb   : >> { %v949_v54 = vpop.f32.mrf.mxu0 }
 0x4cc   : >> { %v953_v55 = vadd.f32 %v1457_v18, %v949_v54  ;;  %v1294_v18 = vor.u32 %v1630_v11, %v1625_v10  ;;  %v1418_v11 = vld [vmem:[%s1870_s12] ss:$0 sm:$0xff] (%p609_p5) }
 0x4ce   : >> { %v957_v56 = vadd.f32 %v955_v53, %v953_v55  ;;  %1014 = vmatpush.bf16.msra.mxu1 %v1294_v18 }
 0x4d0   : >> { %v958_v57 = vsel %vm614_vm1, %v957_v56, 0.0 }
 0x4d1   : >> { %959 = vadd.xlane.f32.xlu0 %v958_v57 }
 0x4d3   : >> { %v951_v58 = vpop.f32.mrf.mxu0 }
 0x4d4   : >> { %v1023_v58 = vperm.slane %v1723_v30, 0 }
 0x544   : >> { %v960_v59 = vpop.xlane.xlu0 %959 }
 0x545   : >> { %v961_v60 = vmul.f32 %v960_v59, %v1739_v40 }
 0x547   : >> { %v962_v61 = vsub.f32 %v957_v56, %v961_v60 }
 0x549   : >> { %v963_v62 = vmul.f32 %v962_v61, %v962_v61 }
 0x54b   : >> { %v964_v63 = vsel %vm614_vm1, %v963_v62, 0.0 }
 0x54c   : >> { %965 = vadd.xlane.f32.xlu2 %v964_v63 }
 0x5bf   : >> { %v966_v31 = vpop.xlane.xlu2 %965 }
 0x5c0   : >> { %v967_v33 = vmul.f32 %v966_v31, %v1739_v40 }
 0x5c2   : >> { %v968_v35 = vadd.f32 1e-05, %v967_v33 }
 0x5c4   : >> { %1416 = vrsqrt.f32 %v968_v35  ;;  %vm975_vm11 = vweird.f32 %v968_v35 }
 0x5ca   : >> { %v1417_v36 = vpop.eup %1416 }
 0x5cb   : >> { %v970_v37 = vmul.f32 %v1417_v36, %v968_v35  ;;  %vm976_vm10 = vweird.f32 %v1417_v36 }
 0x5cc   : >> { %vm977_vm12 = vmor %vm975_vm11, %vm976_vm10 }
 0x5cd   : >> { %v971_v38 = vmul.f32 %v1417_v36, %v970_v37 }
 0x5cf   : >> { %v972_v39 = vmul.f32 0.5, %v971_v38 }
 0x5d1   : >> { %v973_v41 = vsub.f32 1.5, %v972_v39 }
 0x5d3   : >> { %v974_v42 = vmul.f32 %v1417_v36, %v973_v41 }
 0x5d5   : >> { %v978_v43 = vsel %vm977_vm12, %v1417_v36, %v974_v42 }
 0x5d6   : >> { %v979_v44 = vmul.f32 %v978_v43, %v962_v61 }
 0x5d8   : >> { %v983_v46 = vmul.f32 %v981_v8, %v979_v44 }
 0x5da   : >> { %v987_v47 = vadd.f32 %v985_v45, %v983_v46 }
 0x5dc   : >> { %v988_v48 = vpack.c.bf16 %v987_v47, %v987_v47 }
 0x5de   : >> { %1299 = vmatmul.msk.bf16.vlgmr.msra.gmra.mxu1 %vm614_vm1, %v988_v48 }
 0x65b   : >> { %v1016_v52 = vpop.f32.mrf.mxu1 }
 0x65c   : >> { %v1017_v53 = vadd.f32 %v1016_v52, %v990_v51 }
 0x65e   : >> { %v1020_v54 = vmax.f32 %v1017_v53, 0.0 }
 0x660   : >> { %v1021_v55 = vpack.c.bf16 %v1020_v54, %v1020_v54 }
 0x662   : >> { %1316 = vmatmul.msk.bf16.vlgmr.msra.gmra.mxu3 %vm1049_vm13, %v1021_v55 }
 0x663   : >> { %v1018_v57 = vpop.f32.mrf.mxu1 }
 0x6e5   : >> { %v1062_v59 = vpop.f32.mrf.mxu3 }
 0x6e6   : >> { %v1063_v60 = vadd.f32 %v1062_v59, %v1023_v58 }
 0x6e8   : >> { %v1066_v61 = vadd.f32 %v1063_v60, %v957_v56   ;;  %v1339_v56 = vld [vmem:[%s1872_s14 + $0x8] sm:$0xff] (%p609_p5) }
 0x6e9   : > { %611 = sbr.rel (!%p609_p5) target bundleno = 28 (0x1c), region = 131  ;;  %1141 = vmatpush.bf16.msra.mxu0 (%p609_p5), %v1339_v56 }
 0x6ea   : >> { %v1881_v18 = vmov %v1066_v61  ;;  %v1070_v63 = vsel (%p609_p5), %vm614_vm1, %v1066_v61, 0.0 }
 0x6eb   : > { %1071 = vadd.xlane.f32.xlu0 (%p609_p5), %v1070_v63 }
 0x6ed   : >> { %v1064_v62 = vpop.f32.mrf.mxu3  ;;  %1142 = vmatpush.bf16.msra.mxu0 (%p609_p5), %v1338_v0 }
 0x75e   : > { %v1072_v2 = vpop.xlane.xlu0 %1071 }
 0x75f   : > { %v1080_v18 = vmul.f32 %v1072_v2, %v1739_v40 }
 0x761   : > { %v1081_v14 = vsub.f32 %v1066_v61, %v1080_v18 }
 0x763   : > { %v1082_v31 = vmul.f32 %v1081_v14, %v1081_v14 }
 0x765   : > { %v1083_v33 = vsel %vm614_vm1, %v1082_v31, 0.0 }
 0x766   : > { %1084 = vadd.xlane.f32.xlu0 %v1083_v33 }
 0x7d9   : > { %v1085_v34 = vpop.xlane.xlu0 %1084 }
 0x7da   : > { %v1086_v1 = vmul.f32 %v1085_v34, %v1739_v40 }
 0x7dc   : > { %v1087_v3 = vadd.f32 1e-05, %v1086_v1 }
 0x7de   : > { %1421 = vrsqrt.f32 %v1087_v3  ;;  %vm1094_vm15 = vweird.f32 %v1087_v3 }
 0x7e4   : > { %v1422_v4 = vpop.eup %1421 }
 0x7e5   : > { %v1089_v5 = vmul.f32 %v1422_v4, %v1087_v3  ;;  %vm1095_vm14 = vweird.f32 %v1422_v4 }
 0x7e6   : > { %vm1096_vm0 = vmor %vm1094_vm15, %vm1095_vm14 }
 0x7e7   : > { %v1090_v6 = vmul.f32 %v1422_v4, %v1089_v5 }
 0x7e9   : > { %v1091_v7 = vmul.f32 0.5, %v1090_v6 }
 0x7eb   : > { %v1092_v9 = vsub.f32 1.5, %v1091_v7 }
 0x7ed   : > { %v1093_v10 = vmul.f32 %v1422_v4, %v1092_v9 }
 0x7ef   : > { %v1097_v12 = vsel %vm1096_vm0, %v1422_v4, %v1093_v10 }
 0x7f0   : > { %v1098_v13 = vmul.f32 %v1097_v12, %v1081_v14 }
 0x7f2   : > { %v1102_v16 = vmul.f32 %v1418_v11, %v1098_v13 }
 0x7f4   : > { %v1106_v17 = vadd.f32 %v1419_v15, %v1102_v16 }
 0x7f6   : > { %v1107_v19 = vpack.c.bf16 %v1106_v17, %v1106_v17 }
 0x7f8   : > { %1109 = vst.msk [vmem:[#allocation2] sm:$0xf] %vm1108_vm2, %v1107_v19 }
 0x7ff   : > { %v1110_v20 = vld [vmem:[#allocation2] sm:$0xf] }
 0x800   : > { %1325 = vmatmul.msk.bf16.vlgmr.msra.gmra.mxu0 %vm614_vm1, %v1110_v20 }
 0x87d   : > { %v1144_v22 = vpop.f32.mrf.mxu0 }
 0x87e   : > { %v1145_v23 = vadd.f32 %v1420_v21, %v1144_v22 }
 0x880   : > { %1148 = vst [vmem:[%s1648_s18] sm:$0xff] %v1145_v23 }
 0x885   : > { %v1146_v24 = vpop.f32.mrf.mxu0 }
 0x886 PF: > { %s26_s23 = sadd.s32 1, %s1453_s23   ;;  %s1882_s21 = smov %s1449_s22 }
 0x887   : > { %p23_p6 = scmp.ge.s32.totalorder %s26_s23, 4   ;;  %s1883_s22 = smov %s1885_s24 }
 0x889   :  { %25 = sbr.rel (!%p23_p6) target bundleno = 4 (0x4), region = 142 }

</bundles_post_ra>
